<compile_context>
chip_gen: v6e
topology: v6e:2x2x1
jax: 0.10.0
libtpu: 0.0.40
codegen_flags: <defaults>
</compile_context>

<pallas_src>
import math

import jax
import jax.numpy as jnp
from jax.experimental import pallas as pl
from jax.experimental.pallas import tpu as pltpu

# q_pars (small, deterministic)
N_QUBITS = 5
N_A_QUBITS = 1
Q_DEPTH = 6
N_GENERATORS = 4
Q_DELTA = 1.0

PATCH_SIZE = 2 ** (N_QUBITS - N_A_QUBITS)  # 16
DIM = 2 ** N_QUBITS                        # 32 statevector amplitudes
OUT_WIDTH = N_GENERATORS * PATCH_SIZE      # 64 output columns


def _patch_gen_kernel(x_ref, u_ref, o_ref):
    """Single step: whole batch, all generators fused into one matmul."""
    B = x_ref.shape[0]

    x = x_ref[...]                      # (B, n_qubits) noise angles
    cn = jnp.cos(0.5 * x)               # RY(noise) half-angle cos / sin
    sn = jnp.sin(0.5 * x)

    # Product state from RY(noise) on |0...0>; qubit 0 = MSB (PennyLane probs order).
    lane = jax.lax.broadcasted_iota(jnp.int32, (B, DIM), 1)
    psi = jnp.ones((B, DIM), jnp.float32)
    for q in range(N_QUBITS):
        bit = (lane >> (N_QUBITS - 1 - q)) & 1
        psi = psi * jnp.where(bit == 0, cn[:, q:q + 1], sn[:, q:q + 1])

    # Single fused matmul: (B,32) @ (32, n_gen*patch) -> patch amplitudes, all gens.
    amp = jnp.dot(psi, u_ref[...],
                  preferred_element_type=jnp.float32,
                  precision=jax.lax.Precision.HIGHEST)
    probs = amp * amp                   # (B, 64)

    # Per-generator max-normalisation.  The division by sum(probs) in the original
    # partial_measure cancels exactly against this, so it is omitted (exact).
    for g in range(N_GENERATORS):
        seg = probs[:, g * PATCH_SIZE:(g + 1) * PATCH_SIZE]
        mx = jnp.max(seg, axis=1, keepdims=True)
        o_ref[:, g * PATCH_SIZE:(g + 1) * PATCH_SIZE] = (
            seg * pl.reciprocal(mx, approx=True))


def _build_patch_unitaries(q_params):
    """(n_gen, q_depth*n_qubits) weights -> (32, n_gen*16) fused circuit operand.

    Column g*PATCH_SIZE + j holds <j| U_g |k> for row index k, restricted to the
    first PATCH_SIZE output basis states (the ones kept by partial_measure).
    Batch-independent wrapper glue, traced/compiled once per parameter set."""
    w = q_params.reshape(N_GENERATORS, Q_DEPTH, N_QUBITS).astype(jnp.float32)
    c = jnp.cos(0.5 * w)
    s = jnp.sin(0.5 * w)

    idx = jnp.arange(DIM)
    bits = [((idx >> (N_QUBITS - 1 - q)) & 1) for q in range(N_QUBITS)]
    cz = jnp.ones((DIM,), jnp.float32)
    for q in range(N_QUBITS - 1):
        cz = jnp.where((bits[q] & bits[q + 1]) == 1, -cz, cz)

    rowk = idx[:, None]   # input basis index k
    colj = idx[None, :]   # output basis index j

    cols = []
    for g in range(N_GENERATORS):
        U = jnp.eye(DIM, dtype=jnp.float32)
        for d in range(Q_DEPTH):
            # layer[k, j] = prod_q RY(w[d,q])[bit_q(j), bit_q(k)]  (right-multiply form)
            layer = jnp.ones((DIM, DIM), jnp.float32)
            for q in range(N_QUBITS):
                p = N_QUBITS - 1 - q
                bk = (rowk >> p) & 1
                bj = (colj >> p) & 1
                cc = c[g, d, q]
                ss = s[g, d, q]
                layer = layer * jnp.where(bj == bk, cc,
                                          jnp.where(bj == 0, -ss, ss))
            # RY layer followed by the diagonal CZ ladder (scales output column j)
            U = jnp.matmul(U, layer * cz[None, :],
                           precision=jax.lax.Precision.HIGHEST)
        cols.append(U[:, :PATCH_SIZE])
    return jnp.concatenate(cols, axis=1)          # (32, 64)


def patch_quantum_generator(x, q_params):
    """x: (B, n_qubits) noise; q_params: (n_generators, q_depth * n_qubits).
    Returns (B, n_generators * patch_size), matching the PyTorch concatenation order."""
    B = x.shape[0]
    u_cat = _build_patch_unitaries(q_params)      # (32, 64) fused, batch-independent

    # Single grid step; tiny operands live fully in VMEM; output is already in the
    # final lane-dense layout (no wrapper transpose / reshape).
    # TODO(synk): for large B, tile the batch (grid over B with "parallel" semantics).
    return pl.pallas_call(
        _patch_gen_kernel,
        out_shape=jax.ShapeDtypeStruct((B, OUT_WIDTH), jnp.float32),
        in_specs=[
            pl.BlockSpec(memory_space=pltpu.MemorySpace.VMEM),   # noise (B, 5)
            pl.BlockSpec(memory_space=pltpu.MemorySpace.VMEM),   # fused unitary (32, 64)
        ],
        out_specs=pl.BlockSpec(memory_space=pltpu.MemorySpace.VMEM),
    )(x.astype(jnp.float32), u_cat)


def _reference(x, q_params):
    """Pure-JAX statevector reference (faithful to the PyTorch/PennyLane math,
    including the redundant sum-normalisation) for a sanity check."""
    w = q_params.reshape(N_GENERATORS, Q_DEPTH, N_QUBITS)
    idx = jnp.arange(DIM)
    bits = [(idx >> (N_QUBITS - 1 - q)) & 1 for q in range(N_QUBITS)]
    cz = jnp.ones((DIM,), jnp.float32)
    for q in range(N_QUBITS - 1):
        cz = jnp.where((bits[q] & bits[q + 1]) == 1, -cz, cz)
    gens = []
    for g in range(N_GENERATORS):
        patches = []
        for b in range(x.shape[0]):
            psi = jnp.ones((1,), jnp.float32)
            for q in range(N_QUBITS):
                t = x[b, q]
                psi = jnp.kron(psi, jnp.stack([jnp.cos(t / 2), jnp.sin(t / 2)]))
            for d in range(Q_DEPTH):
                U = jnp.ones((1, 1), jnp.float32)
                for q in range(N_QUBITS):
                    th = w[g, d, q]
                    c, s = jnp.cos(th / 2), jnp.sin(th / 2)
                    ry = jnp.stack([jnp.stack([c, -s]), jnp.stack([s, c])])
                    U = jnp.kron(U, ry)
                psi = (U @ psi) * cz
            probs = psi * psi
            pg0 = probs[:PATCH_SIZE] / jnp.sum(probs)
            patches.append(pg0 / jnp.max(pg0))
        gens.append(jnp.stack(patches))
    out = jnp.stack(gens)  # (n_gen, B, patch)
    return jnp.transpose(out, (1, 0, 2)).reshape(x.shape[0], -1)


if __name__ == "__main__":
    key = jax.random.PRNGKey(0)
    k_x, k_p = jax.random.split(key)

    batch = 2
    # noise input, as in the patch quantum GAN (uniform * pi/2)
    x = jax.random.uniform(k_x, (batch, N_QUBITS), jnp.float32) * (math.pi / 2)
    # deterministic parameter init: q_delta * rand(q_depth * n_qubits) per generator
    q_params = Q_DELTA * jax.random.uniform(
        k_p, (N_GENERATORS, Q_DEPTH * N_QUBITS), jnp.float32)

    out = patch_quantum_generator(x, q_params)
    out = jax.block_until_ready(out)

    assert out.shape == (batch, N_GENERATORS * PATCH_SIZE), out.shape
    ref = jax.block_until_ready(_reference(x, q_params))
    assert jnp.allclose(out, ref, atol=2e-3, rtol=2e-3), (
        float(jnp.max(jnp.abs(out - ref))))

    print("KERNEL_OK")
</pallas_src>

<mosaic_0001>
module attributes {stable_mosaic.version = 11 : i64} {
  func.func @_patch_gen_kernel(%arg0: memref<2x5xf32, #tpu.memory_space<vmem>>, %arg1: memref<32x64xf32, #tpu.memory_space<vmem>>, %arg2: memref<2x64xf32, #tpu.memory_space<vmem>>) attributes {dimension_semantics = [], scalar_prefetch = 0 : i64, scratch_operands = 0 : i64, tpu.core_type = #tpu.core_type<tc>} {
    %c0 = arith.constant 0 : index
    %c0_0 = arith.constant 0 : index
    %0 = vector.load %arg0[%c0, %c0_0] : memref<2x5xf32, #tpu.memory_space<vmem>>, vector<2x5xf32>
    %cst = arith.constant 5.000000e-01 : f32
    %1 = vector.broadcast %cst : f32 to vector<2x5xf32>
    %2 = arith.mulf %1, %0 : vector<2x5xf32>
    %3 = math.cos %2 : vector<2x5xf32>
    %cst_1 = arith.constant 5.000000e-01 : f32
    %4 = vector.broadcast %cst_1 : f32 to vector<2x5xf32>
    %5 = arith.mulf %4, %0 : vector<2x5xf32>
    %6 = math.sin %5 : vector<2x5xf32>
    %7 = tpu.iota {dimensions = array<i32: 1>} : vector<2x32xi32>
    %cst_2 = arith.constant 1.000000e+00 : f32
    %8 = vector.broadcast %cst_2 : f32 to vector<2x32xf32>
    %c4_i32 = arith.constant 4 : i32
    %9 = vector.broadcast %c4_i32 : i32 to vector<2x32xi32>
    %10 = arith.shrsi %7, %9 : vector<2x32xi32>
    %c1_i32 = arith.constant 1 : i32
    %11 = vector.broadcast %c1_i32 : i32 to vector<2x32xi32>
    %12 = arith.andi %10, %11 : vector<2x32xi32>
    %c0_i32 = arith.constant 0 : i32
    %13 = vector.broadcast %c0_i32 : i32 to vector<2x32xi32>
    %14 = arith.cmpi eq, %12, %13 : vector<2x32xi32>
    %15 = vector.extract_strided_slice %3 {offsets = [0, 0], sizes = [2, 1], strides = [1, 1]} : vector<2x5xf32> to vector<2x1xf32>
    %16 = vector.extract_strided_slice %6 {offsets = [0, 0], sizes = [2, 1], strides = [1, 1]} : vector<2x5xf32> to vector<2x1xf32>
    %17 = vector.shape_cast %15 : vector<2x1xf32> to vector<2x1xf32>
    %18 = vector.broadcast %17 : vector<2x1xf32> to vector<2x32xf32>
    %19 = vector.shape_cast %16 : vector<2x1xf32> to vector<2x1xf32>
    %20 = vector.broadcast %19 : vector<2x1xf32> to vector<2x32xf32>
    %21 = arith.select %14, %18, %20 : vector<2x32xi1>, vector<2x32xf32>
    %22 = arith.mulf %8, %21 : vector<2x32xf32>
    %c3_i32 = arith.constant 3 : i32
    %23 = vector.broadcast %c3_i32 : i32 to vector<2x32xi32>
    %24 = arith.shrsi %7, %23 : vector<2x32xi32>
    %c1_i32_3 = arith.constant 1 : i32
    %25 = vector.broadcast %c1_i32_3 : i32 to vector<2x32xi32>
    %26 = arith.andi %24, %25 : vector<2x32xi32>
    %c0_i32_4 = arith.constant 0 : i32
    %27 = vector.broadcast %c0_i32_4 : i32 to vector<2x32xi32>
    %28 = arith.cmpi eq, %26, %27 : vector<2x32xi32>
    %29 = vector.extract_strided_slice %3 {offsets = [0, 1], sizes = [2, 1], strides = [1, 1]} : vector<2x5xf32> to vector<2x1xf32>
    %30 = vector.extract_strided_slice %6 {offsets = [0, 1], sizes = [2, 1], strides = [1, 1]} : vector<2x5xf32> to vector<2x1xf32>
    %31 = vector.shape_cast %29 : vector<2x1xf32> to vector<2x1xf32>
    %32 = vector.broadcast %31 : vector<2x1xf32> to vector<2x32xf32>
    %33 = vector.shape_cast %30 : vector<2x1xf32> to vector<2x1xf32>
    %34 = vector.broadcast %33 : vector<2x1xf32> to vector<2x32xf32>
    %35 = arith.select %28, %32, %34 : vector<2x32xi1>, vector<2x32xf32>
    %36 = arith.mulf %22, %35 : vector<2x32xf32>
    %c2_i32 = arith.constant 2 : i32
    %37 = vector.broadcast %c2_i32 : i32 to vector<2x32xi32>
    %38 = arith.shrsi %7, %37 : vector<2x32xi32>
    %c1_i32_5 = arith.constant 1 : i32
    %39 = vector.broadcast %c1_i32_5 : i32 to vector<2x32xi32>
    %40 = arith.andi %38, %39 : vector<2x32xi32>
    %c0_i32_6 = arith.constant 0 : i32
    %41 = vector.broadcast %c0_i32_6 : i32 to vector<2x32xi32>
    %42 = arith.cmpi eq, %40, %41 : vector<2x32xi32>
    %43 = vector.extract_strided_slice %3 {offsets = [0, 2], sizes = [2, 1], strides = [1, 1]} : vector<2x5xf32> to vector<2x1xf32>
    %44 = vector.extract_strided_slice %6 {offsets = [0, 2], sizes = [2, 1], strides = [1, 1]} : vector<2x5xf32> to vector<2x1xf32>
    %45 = vector.shape_cast %43 : vector<2x1xf32> to vector<2x1xf32>
    %46 = vector.broadcast %45 : vector<2x1xf32> to vector<2x32xf32>
    %47 = vector.shape_cast %44 : vector<2x1xf32> to vector<2x1xf32>
    %48 = vector.broadcast %47 : vector<2x1xf32> to vector<2x32xf32>
    %49 = arith.select %42, %46, %48 : vector<2x32xi1>, vector<2x32xf32>
    %50 = arith.mulf %36, %49 : vector<2x32xf32>
    %c1_i32_7 = arith.constant 1 : i32
    %51 = vector.broadcast %c1_i32_7 : i32 to vector<2x32xi32>
    %52 = arith.shrsi %7, %51 : vector<2x32xi32>
    %c1_i32_8 = arith.constant 1 : i32
    %53 = vector.broadcast %c1_i32_8 : i32 to vector<2x32xi32>
    %54 = arith.andi %52, %53 : vector<2x32xi32>
    %c0_i32_9 = arith.constant 0 : i32
    %55 = vector.broadcast %c0_i32_9 : i32 to vector<2x32xi32>
    %56 = arith.cmpi eq, %54, %55 : vector<2x32xi32>
    %57 = vector.extract_strided_slice %3 {offsets = [0, 3], sizes = [2, 1], strides = [1, 1]} : vector<2x5xf32> to vector<2x1xf32>
    %58 = vector.extract_strided_slice %6 {offsets = [0, 3], sizes = [2, 1], strides = [1, 1]} : vector<2x5xf32> to vector<2x1xf32>
    %59 = vector.shape_cast %57 : vector<2x1xf32> to vector<2x1xf32>
    %60 = vector.broadcast %59 : vector<2x1xf32> to vector<2x32xf32>
    %61 = vector.shape_cast %58 : vector<2x1xf32> to vector<2x1xf32>
    %62 = vector.broadcast %61 : vector<2x1xf32> to vector<2x32xf32>
    %63 = arith.select %56, %60, %62 : vector<2x32xi1>, vector<2x32xf32>
    %64 = arith.mulf %50, %63 : vector<2x32xf32>
    %c0_i32_10 = arith.constant 0 : i32
    %65 = vector.broadcast %c0_i32_10 : i32 to vector<2x32xi32>
    %66 = arith.shrsi %7, %65 : vector<2x32xi32>
    %c1_i32_11 = arith.constant 1 : i32
    %67 = vector.broadcast %c1_i32_11 : i32 to vector<2x32xi32>
    %68 = arith.andi %66, %67 : vector<2x32xi32>
    %c0_i32_12 = arith.constant 0 : i32
    %69 = vector.broadcast %c0_i32_12 : i32 to vector<2x32xi32>
    %70 = arith.cmpi eq, %68, %69 : vector<2x32xi32>
    %71 = vector.extract_strided_slice %3 {offsets = [0, 4], sizes = [2, 1], strides = [1, 1]} : vector<2x5xf32> to vector<2x1xf32>
    %72 = vector.extract_strided_slice %6 {offsets = [0, 4], sizes = [2, 1], strides = [1, 1]} : vector<2x5xf32> to vector<2x1xf32>
    %73 = vector.shape_cast %71 : vector<2x1xf32> to vector<2x1xf32>
    %74 = vector.broadcast %73 : vector<2x1xf32> to vector<2x32xf32>
    %75 = vector.shape_cast %72 : vector<2x1xf32> to vector<2x1xf32>
    %76 = vector.broadcast %75 : vector<2x1xf32> to vector<2x32xf32>
    %77 = arith.select %70, %74, %76 : vector<2x32xi1>, vector<2x32xf32>
    %78 = arith.mulf %64, %77 : vector<2x32xf32>
    %c0_13 = arith.constant 0 : index
    %c0_14 = arith.constant 0 : index
    %79 = vector.load %arg1[%c0_13, %c0_14] : memref<32x64xf32, #tpu.memory_space<vmem>>, vector<32x64xf32>
    %cst_15 = arith.constant dense<0.000000e+00> : vector<2x64xf32>
    %80 = tpu.matmul %78, %79, %cst_15 {dimension_numbers = #tpu.dot_dimension_numbers<[1], [0], [0], [1], [0, 0, 1, 1], [], []>, precision = #tpu.contract_precision<fp32>} : vector<2x32xf32>, vector<32x64xf32>, vector<2x64xf32> -> vector<2x64xf32>
    %81 = arith.mulf %80, %80 : vector<2x64xf32>
    %82 = vector.extract_strided_slice %81 {offsets = [0, 0], sizes = [2, 16], strides = [1, 1]} : vector<2x64xf32> to vector<2x16xf32>
    %cst_16 = arith.constant dense<0xFF800000> : vector<2xf32>
    %83 = vector.multi_reduction <maximumf>, %82, %cst_16 [1] : vector<2x16xf32> to vector<2xf32>
    %84 = vector.shape_cast %83 : vector<2xf32> to vector<2x1xf32>
    %85 = tpu.reciprocal %84 {approx = true} : vector<2x1xf32> -> vector<2x1xf32>
    %86 = vector.broadcast %85 : vector<2x1xf32> to vector<2x16xf32>
    %87 = arith.mulf %82, %86 : vector<2x16xf32>
    %c0_17 = arith.constant 0 : index
    %c0_18 = arith.constant 0 : index
    %88 = vector.load %arg2[%c0_17, %c0_18] : memref<2x64xf32, #tpu.memory_space<vmem>>, vector<2x16xf32>
    tpu.vector_store %arg2[%c0_17, %c0_18], %87 {strides = array<i32>} : memref<2x64xf32, #tpu.memory_space<vmem>>, vector<2x16xf32>,
    %89 = vector.extract_strided_slice %81 {offsets = [0, 16], sizes = [2, 16], strides = [1, 1]} : vector<2x64xf32> to vector<2x16xf32>
    %cst_19 = arith.constant dense<0xFF800000> : vector<2xf32>
    %90 = vector.multi_reduction <maximumf>, %89, %cst_19 [1] : vector<2x16xf32> to vector<2xf32>
    %91 = vector.shape_cast %90 : vector<2xf32> to vector<2x1xf32>
    %92 = tpu.reciprocal %91 {approx = true} : vector<2x1xf32> -> vector<2x1xf32>
    %93 = vector.broadcast %92 : vector<2x1xf32> to vector<2x16xf32>
    %94 = arith.mulf %89, %93 : vector<2x16xf32>
    %c0_20 = arith.constant 0 : index
    %c16 = arith.constant 16 : index
    %95 = vector.load %arg2[%c0_20, %c16] : memref<2x64xf32, #tpu.memory_space<vmem>>, vector<2x16xf32>
    tpu.vector_store %arg2[%c0_20, %c16], %94 {strides = array<i32>} : memref<2x64xf32, #tpu.memory_space<vmem>>, vector<2x16xf32>,
    %96 = vector.extract_strided_slice %81 {offsets = [0, 32], sizes = [2, 16], strides = [1, 1]} : vector<2x64xf32> to vector<2x16xf32>
    %cst_21 = arith.constant dense<0xFF800000> : vector<2xf32>
    %97 = vector.multi_reduction <maximumf>, %96, %cst_21 [1] : vector<2x16xf32> to vector<2xf32>
    %98 = vector.shape_cast %97 : vector<2xf32> to vector<2x1xf32>
    %99 = tpu.reciprocal %98 {approx = true} : vector<2x1xf32> -> vector<2x1xf32>
    %100 = vector.broadcast %99 : vector<2x1xf32> to vector<2x16xf32>
    %101 = arith.mulf %96, %100 : vector<2x16xf32>
    %c0_22 = arith.constant 0 : index
    %c32 = arith.constant 32 : index
    %102 = vector.load %arg2[%c0_22, %c32] : memref<2x64xf32, #tpu.memory_space<vmem>>, vector<2x16xf32>
    tpu.vector_store %arg2[%c0_22, %c32], %101 {strides = array<i32>} : memref<2x64xf32, #tpu.memory_space<vmem>>, vector<2x16xf32>,
    %103 = vector.extract_strided_slice %81 {offsets = [0, 48], sizes = [2, 16], strides = [1, 1]} : vector<2x64xf32> to vector<2x16xf32>
    %cst_23 = arith.constant dense<0xFF800000> : vector<2xf32>
    %104 = vector.multi_reduction <maximumf>, %103, %cst_23 [1] : vector<2x16xf32> to vector<2xf32>
    %105 = vector.shape_cast %104 : vector<2xf32> to vector<2x1xf32>
    %106 = tpu.reciprocal %105 {approx = true} : vector<2x1xf32> -> vector<2x1xf32>
    %107 = vector.broadcast %106 : vector<2x1xf32> to vector<2x16xf32>
    %108 = arith.mulf %103, %107 : vector<2x16xf32>
    %c0_24 = arith.constant 0 : index
    %c48 = arith.constant 48 : index
    %109 = vector.load %arg2[%c0_24, %c48] : memref<2x64xf32, #tpu.memory_space<vmem>>, vector<2x16xf32>
    tpu.vector_store %arg2[%c0_24, %c48], %108 {strides = array<i32>} : memref<2x64xf32, #tpu.memory_space<vmem>>, vector<2x16xf32>,
    return
  }
}

</mosaic_0001>

<bundles_post_ra>
// kernel: tpu_custom_call.1
= control target key start
LH: loop header
LB: loop body
LE: loop exit
PB: predicated region body
PF: predicated region fallthrough
CT: control target
= control target key end

     0   :  { %7 = vsyncpa [#allocation3], 0  ;;  %s1231_s0 = inlined_call_operand.hbm [shape: f32[2,5], index: 0, kind: input, shape index: {}]   ;;  %s1232_s1 = inlined_call_operand.hbm [shape: f32[32,64], index: 1, kind: input, shape index: {}]   ;;  %s1233_s2 = inlined_call_operand.hbm [shape: f32[2,64], index: 2, kind: output, shape index: {}]  }
   0x1   :  { %8 = vsyncpa [#allocation6], 0 }
   0x2   :  { %9 = vsyncpa [#allocation4], 0  ;;  %s1064_s9 = smov [#allocation2]   ;;  %s1065_s11 = smov [#allocation5]  }
   0x3   :  { %s16_s10 = sshll.u32 %s1064_s9, 4  ;;  %s25_s12 = sshll.u32 %s1065_s11, 4  ;;  %s17_s10 = int_to_ptr.vmem [resolvable:$true] %s16_s10  ;;  %s26_s12 = int_to_ptr.vmem [resolvable:$true] %s25_s12 }
   0x4   :  { %s1006_s13 = scalar_lea.vmem %s17_s10, 32  ;;  %p1011_p1 = scmp.lt.s32.totalorder %s17_s10, %s17_s10 }
   0x5   :  { %p1007_p0 = scmp.ne.s32.totalorder %s17_s10, %s1006_s13  ;;  %p1012_p2 = scmp.lt.s32.totalorder %s1006_s13, %s1006_s13 }
   0x7   :  { %p1013_p3 = por %p1012_p2, %p1011_p1 }
   0x9   :  { %p1014_p4 = pnand %p1013_p3, %p1007_p0 }
   0xb   :  { %1017 = shalt.err (!%p1014_p4)
}
   0xc   :  { %19 = dma.hbm_to_vmem [thread:$0]  %s1231_s0, 32, %s17_s10, [#allocation3]  }
   0xd   :  { %s1026_s16 = scalar_lea.vmem %s26_s12, 512  ;;  %p1031_p6 = scmp.lt.s32.totalorder %s26_s12, %s26_s12 }
   0xe   :  { %p1027_p5 = scmp.ne.s32.totalorder %s26_s12, %s1026_s16  ;;  %p1032_p7 = scmp.lt.s32.totalorder %s1026_s16, %s1026_s16 }
  0x10   :  { %p1033_p8 = por %p1032_p7, %p1031_p6 }
  0x12   :  { %p1034_p9 = pnand %p1033_p8, %p1027_p5 }
  0x14   :  { %1037 = shalt.err (!%p1034_p9)
}
  0x15   :  { %s1066_s17 = smov 128   ;;  %s1067_s18 = smov 8  }
  0x16   :  { %31 = dma.hbm_to_vmem [thread:$0]  %s1232_s1, 512, %s26_s12, [#allocation6], %s1066_s17, %s1066_s17, %s1067_s18  }
  0x17   :  { %1058 = dma.done.wait [#allocation3], 32  }
  0x18   :  { %1059 = vsyncadd [#allocation3], 4294967264 }
  0x19   :  { %1060 = dma.done.wait [#allocation6], 512  }
  0x1a   :  { %1061 = vsyncadd [#allocation6], 4294966784  ;;  %v1068_v0 = vmov 1   ;;  %v1069_v1 = vmov 0   ;;  %v38_v2 = vld [vmem:[#allocation2] sm:$0x3] }
  0x1b   :  { %979 = vset.pattern.permute.xlu1 %v1068_v0  ;;  %978 = vset.pattern.permute.xlu0 %v1069_v1  ;;  %v1103_v3 = vmul.f32 0.5, %v38_v2  ;;  %v1070_v15 = vmov 683565275   ;;  %v1071_v17 = vmov 2475754826   ;;  %s1081_s0 = smov [#allocation7]  }
  0x1c   :  { %v1072_v19 = vmov 2131351028   ;;  %v1073_v21 = vmov 2102212464   ;;  %v1074_v23 = vmov 920167782  }
  0x1d   :  { %v43_v4 = vand.u32 2139095040, %v1103_v3  ;;  %v40_v6 = vand.u32 2147483647, %v1103_v3  ;;  %v1075_v30 = vmov 1326507024   ;;  %vm42_vm7 = vcmp.lt.s32.totalorder %v1103_v3, 0 }
  0x1e   :  { %vm132_vm15 = vweird.f32 %v1103_v3  ;;  %s842_s1 = sshll.u32 %s1081_s0, 4  ;;  %s843_s1 = int_to_ptr.vmem [resolvable:$true] %s842_s1 }
  0x1f   :  { %v44_v5 = vshrl.u32 %v43_v4, 23  ;;  %v47_v9 = vand.u32 8388607, %v40_v6  ;;  %vm41_vm8 = vcmp.le.f32.partialorder %v40_v6, 0.7853982  ;;  %s1038_s21 = scalar_lea.vmem %s843_s1, 32  ;;  %p1043_p11 = scmp.lt.s32.totalorder %s843_s1, %s843_s1 }
  0x20   :  { %p1039_p10 = scmp.ne.s32.totalorder %s843_s1, %s1038_s21  ;;  %p1044_p12 = scmp.lt.s32.totalorder %s1038_s21, %s1038_s21 }
  0x21   :  { %v852_v7 = vadd.s32 4294967169, %v44_v5  ;;  %v48_v12 = vor.u32 8388608, %v47_v9 }
  0x22   :  { %p1045_p13 = por %p1044_p12, %p1043_p11 }
  0x23   :  { %v50_v8 = vadd.s32 1, %v852_v7  ;;  %v88_v32 = vshll.u32 %v48_v12, 8 }
  0x24   :  { %p1046_p0 = pnand %p1045_p13, %p1039_p10 }
  0x25   :  { %vm51_vm0 = vcmp.gt.s32.totalorder %v50_v8, 0 }
  0x26   :  { %v52_v10 = vsel %vm51_vm0, %v50_v8, 0  ;;  %vm1080_vm0 = vmmov 0  }
  0x27   :  { %v54_v11 = vand.u32 31, %v52_v10  ;;  %v53_v13 = vshrl.u32 %v52_v10, 5 }
  0x29   :  { %v55_v14 = vsub.s32 32, %v54_v11  ;;  %v57_v16 = vshll.u32 %v1070_v15, %v54_v11  ;;  %v60_v18 = vshll.u32 %v1071_v17, %v54_v11  ;;  %v63_v20 = vshll.u32 %v1072_v19, %v54_v11 }
  0x2a   :  { %v66_v22 = vshll.u32 %v1073_v21, %v54_v11  ;;  %v69_v24 = vshll.u32 %v1074_v23, %v54_v11  ;;  %vm72_vm1 = vcmp.lt.s32.totalorder %v53_v13, 1  ;;  %vm75_vm2 = vcmp.lt.s32.totalorder %v53_v13, 4 }
  0x2b   :  { %v56_v25 = vshrl.u32 %v1070_v15, %v55_v14  ;;  %v58_v26 = vshrl.u32 %v1071_v17, %v55_v14  ;;  %v61_v27 = vshrl.u32 %v1072_v19, %v55_v14  ;;  %v64_v28 = vshrl.u32 %v1073_v21, %v55_v14 }
  0x2c   :  { %v67_v29 = vshrl.u32 %v1074_v23, %v55_v14  ;;  %v70_v31 = vshrl.u32 %v1075_v30, %v55_v14  ;;  %vm73_vm3 = vcmp.lt.s32.totalorder %v53_v13, 2  ;;  %vm74_vm4 = vcmp.lt.s32.totalorder %v53_v13, 3 }
  0x2d   :  { %v59_v33 = vor.u32 %v58_v26, %v57_v16  ;;  %v62_v34 = vor.u32 %v61_v27, %v60_v18  ;;  %v65_v35 = vor.u32 %v64_v28, %v63_v20 }
  0x2e   :  { %v68_v36 = vor.u32 %v67_v29, %v66_v22  ;;  %v71_v37 = vor.u32 %v70_v31, %v69_v24 }
  0x2f   :  { %v76_v38 = vsel %vm72_vm1, %v56_v25, %v59_v33  ;;  %v77_v39 = vsel %vm75_vm2, %v65_v35, 2102212464  ;;  %v80_v40 = vsel %vm72_vm1, %v59_v33, %v62_v34  ;;  %v84_v41 = vsel %vm72_vm1, %v62_v34, %v65_v35 }
  0x30   :  { %v78_v42 = vsel %vm74_vm4, %v62_v34, %v77_v39  ;;  %v81_v43 = vsel %vm75_vm2, %v68_v36, 920167782  ;;  %v85_v44 = vsel %vm75_vm2, %v71_v37, 1326507024  ;;  %v317_v37 = vld [vmem:[#allocation5 + $0x18] sm:$0xff]  ;;  %v1076_v39 = vmov 2  }
  0x31   :  { %v82_v45 = vsel %vm74_vm4, %v65_v35, %v81_v43  ;;  %v86_v46 = vsel %vm74_vm4, %v68_v36, %v85_v44  ;;  %v79_v47 = vsel %vm73_vm3, %v76_v38, %v78_v42  ;;  %v1124_v38 = vand.u32 4294901760, %v317_v37  ;;  %v315_v42 = vld [vmem:[#allocation5 + $0x8] sm:$0xff] }
  0x32   :  { %v83_v48 = vsel %vm73_vm3, %v80_v40, %v82_v45  ;;  %v87_v49 = vsel %vm73_vm3, %v84_v41, %v86_v46  ;;  %v95_v54 = vmul.u32 %v88_v32, %v79_v47  ;;  %v316_v40 = vld [vmem:[#allocation5 + $0x10] sm:$0xff]  ;;  %v1135_v45 = vand.u32 4294901760, %v315_v42  ;;  %v314_v46 = vld [vmem:[#allocation5] sm:$0xff] }
  0x33   :  { %v1109_v50 = vmul.u32.u64.low %v88_v32, %v87_v49  ;;  %v1110_v51 = vmul.u32.u64.high %v88_v32, %v87_v49, %v1109_v50  ;;  %v1112_v52 = vmul.u32.u64.low %v88_v32, %v83_v48  ;;  %v1113_v53 = vmul.u32.u64.high %v88_v32, %v83_v48, %v1112_v52 }
  0x34   :  { %v1129_v41 = vand.u32 4294901760, %v316_v40  ;;  %v1077_v47 = vmov 3   ;;  %v1142_v50 = vsub.f32 %v315_v42, %v1135_v45 }
  0x35   :  { %vm97_vm5 = vc.u32 %v1110_v51, %v1112_v52  ;;  %v98_v55 = vadd.s32 1, %v1113_v53  ;;  %v96_v2 = vadd.s32 %v1112_v52, %v1110_v51  ;;  %v1144_v51 = vand.u32 4294901760, %v314_v46 }
  0x36   :  { %v1133_v44 = vsub.f32 %v316_v40, %v1129_v41  ;;  %v1078_v52 = vmov 0.0  }
  0x37   :  { %v99_v56 = vsel %vm97_vm5, %v98_v55, %v1113_v53  ;;  %901 = vmatprep.subr.mxu1 %v1078_v52  ;;  %v442_v55 = vand.u32 4294901760, %v1142_v50  ;;  %890 = vmatprep.subr.mxu0 %v1078_v52 }
  0x38   :  { %v100_v57 = vadd.s32 %v99_v56, %v95_v54  ;;  %v435_v49 = vand.u32 4294901760, %v1133_v44  ;;  %v1152_v56 = vsub.f32 %v314_v46, %v1144_v51  ;;  %891 = vmatpush3.msra.mxu0 %v1124_v38  ;;  %909 = vmatprep.mubr.msk.f32.mxu1 %vm1080_vm0, %v1078_v52 }
  0x39   :  { %892 = vmatprep.subr.mxu0 %v1078_v52  ;;  %898 = vmatprep.mubr.msk.f32.mxu0 %vm1080_vm0, %v1078_v52 }
  0x3a   :  { %v101_v58 = vadd.s32 536870912, %v100_v57  ;;  %v436_v54 = vsub.f32 %v1133_v44, %v435_v49  ;;  %893 = vmatpush3.msra.mxu0 %v1129_v41 }
  0x3b   :  { %894 = vmatprep.subr.mxu0 %v1078_v52 }
  0x3c   :  { %v102_v59 = vshrl.u32 %v101_v58, 30  ;;  %v443_v58 = vsub.f32 %v1142_v50, %v442_v55  ;;  %895 = vmatpush3.msra.mxu0 %v1135_v45 }
  0x3d   :  { %896 = vmatprep.subr.mxu0 %v1078_v52 }
  0x3e   :  { %v103_v60 = vshll.u32 %v102_v59, 30  ;;  %v126_v18 = vsub.s32 4, %v102_v59  ;;  %897 = vmatpush3.msra.mxu0 %v1144_v51 }
  0x3f   :  { %912 = vmatprep.subr.mxu0 %v1078_v52 }
  0x40   :  { %v104_v61 = vsub.s32 %v100_v57, %v103_v60  ;;  %v127_v21 = vsel %vm42_vm7, %v126_v18, %v102_v59  ;;  %v437_v57 = vand.u32 4294901760, %v436_v54  ;;  %v449_v59 = vand.u32 4294901760, %v1152_v56 }
  0x41   :  { %v129_v22 = vsel %vm41_vm8, 0, %v127_v21  ;;  %v1079_v60 = vmov 4  }
  0x42   :  { %v106_v62 = vsub.s32 0, %v104_v61  ;;  %v236_v23 = vadd.s32 3, %v129_v22  ;;  %v133_v24 = vand.u32 3, %v129_v22 }
  0x44   :  { %v853_v63 = vmin.u32 %v106_v62, %v104_v61  ;;  %v237_v25 = vand.u32 3, %v236_v23  ;;  %vm138_vm9 = vcmp.eq.s32.totalorder %v133_v24, 2  ;;  %vm135_vm11 = vcmp.eq.s32.totalorder %v133_v24, 0 }
  0x45   :  { %vm134_vm13 = vcmp.lt.s32.totalorder %v133_v24, 2  ;;  %v450_v62 = vsub.f32 %v1152_v56, %v449_v59 }
  0x46   :  { %v108_v0 = vclz %v853_v63  ;;  %vm242_vm10 = vcmp.eq.s32.totalorder %v237_v25, 2  ;;  %vm239_vm12 = vcmp.eq.s32.totalorder %v237_v25, 0  ;;  %vm238_vm14 = vcmp.lt.s32.totalorder %v237_v25, 2 }
  0x47   :  { %v451_v63 = vand.u32 4294901760, %v450_v62 }
  0x48   :  { %v854_v1 = vadd.s32 4294967294, %v108_v0  ;;  %v247_v0 = vlaneseq }
  0x4a   :  { %vm855_vm6 = vcmp.lt.s32.totalorder %v854_v1, 0 }
  0x4b   :  { %v111_v4 = vsel %vm855_vm6, 0, %v854_v1  ;;  %vm318_vm6 = vcmask 261120  }
  0x4c   :  { %v112_v5 = vsub.s32 32, %v111_v4  ;;  %v113_v7 = vshll.u32 %v104_v61, %v111_v4  ;;  %v116_v8 = vsub.s32 4294967266, %v111_v4  ;;  %v444_v61 = vand.u32 4294901760, %v443_v58 }
  0x4d   :  { %v248_v4 = vand.u32 127, %v247_v0 }
  0x4e   :  { %v114_v9 = vshrl.u32 %v96_v2, %v112_v5  ;;  %v117_v10 = vadd.s32 127, %v116_v8 }
  0x4f   :  { %v249_v8 = vshra.s32 %v248_v4, 4  ;;  %v302_v22 = vand.u32 1, %v248_v4 }
  0x50   :  { %v115_v11 = vor.u32 %v114_v9, %v113_v7  ;;  %v118_v12 = vshll.u32 %v117_v10, 23  ;;  %v263_v7 = vshra.s32 %v248_v4, 3  ;;  %v276_v10 = vshra.s32 %v248_v4, 2 }
  0x51   :  { %vm303_vm5 = vcmp.eq.s32.totalorder %v302_v22, 0 }
  0x52   :  { %v119_v13 = vor.u32 4788187, %v118_v12  ;;  %v122_v14 = vcvt.s32.f32 %v115_v11  ;;  %v264_v11 = vand.u32 1, %v263_v7  ;;  %v250_v12 = vand.u32 1, %v249_v8 }
  0x54   :  { %v120_v15 = vand.u32 2147483647, %v119_v13  ;;  %vm265_vm1 = vcmp.eq.s32.totalorder %v264_v11, 0  ;;  %vm251_vm2 = vcmp.eq.s32.totalorder %v250_v12, 0 }
  0x56   :  { %v123_v16 = vmul.f32 %v122_v14, %v120_v15  ;;  %v289_v14 = vshra.s32 %v248_v4, 1  ;;  %v277_v15 = vand.u32 1, %v276_v10 }
  0x58   :  { %v124_v17 = vxor.u32 2147483648, %v123_v16  ;;  %vm278_vm3 = vcmp.eq.s32.totalorder %v277_v15, 0 }
  0x5a   :  { %v125_v19 = vsel %vm42_vm7, %v124_v17, %v123_v16  ;;  %v290_v17 = vand.u32 1, %v289_v14  ;;  %vm815_vm7 = vcmask 255104  }
  0x5b   :  { %v128_v20 = vsel %vm41_vm8, %v1103_v3, %v125_v19  ;;  %v1127_v3 = vsub.f32 %v317_v37, %v1124_v38  ;;  %vm808_vm8 = vcmask 123904  }
  0x5c   :  { %986 = vcosq.f32 %v128_v20  ;;  %vm291_vm4 = vcmp.eq.s32.totalorder %v290_v17, 0 }
  0x5d   :  { %988 = vsinq.f32 %v128_v20  ;;  %v428_v43 = vand.u32 4294901760, %v1127_v3 }
  0x5f   :  { %v429_v48 = vsub.f32 %v1127_v3, %v428_v43 }
  0x61   :  { %v430_v53 = vand.u32 4294901760, %v429_v48 }
  0x63   :  { %902 = vmatpush3.msra.mxu1 %v430_v53 }
  0x64   :  { %903 = vmatprep.subr.mxu1 %v1078_v52 }
  0x65   :  { %904 = vmatpush3.msra.mxu1 %v437_v57 }
  0x66   :  { %905 = vmatprep.subr.mxu1 %v1078_v52 }
  0x67   :  { %906 = vmatpush3.msra.mxu1 %v444_v61 }
  0x68   :  { %907 = vmatprep.subr.mxu1 %v1078_v52 }
  0x69   :  { %v987_v26 = vpop.eup %986  ;;  %908 = vmatpush3.msra.mxu1 %v451_v63 }
  0x6a   :  { %v989_v27 = vpop.eup %988  ;;  %v139_v28 = vxor.u32 2147483648, %v987_v26  ;;  %923 = vmatprep.subr.mxu1 %v1078_v52 }
  0x6b   :  { %v136_v6 = vxor.u32 2147483648, %v989_v27 }
  0x6c   :  { %v140_v29 = vsel %vm138_vm9, %v139_v28, %v989_v27  ;;  %v244_v30 = vsel %vm242_vm10, %v139_v28, %v989_v27  ;;  %vm822_vm9 = vcmask 386304   ;;  %vm829_vm10 = vcmask 517504  }
  0x6d   :  { %v137_v31 = vsel %vm135_vm11, %v987_v26, %v136_v6  ;;  %v241_v32 = vsel %vm239_vm12, %v987_v26, %v136_v6 }
  0x6e   :  { %v141_v33 = vsel %vm134_vm13, %v137_v31, %v140_v29  ;;  %v245_v34 = vsel %vm238_vm14, %v241_v32, %v244_v30 }
  0x6f   :  { %v142_v35 = vsel %vm132_vm15, nan, %v141_v33  ;;  %v246_v36 = vsel %vm132_vm15, nan, %v245_v34 }
  0x70   :  { %267 = vperm.xlu1 %979, %v142_v35   ;;  %254 = vperm.xlu0 %978, %v142_v35  }
  0x74   :  { %271 = vperm.xlu1 %979, %v246_v36   ;;  %259 = vperm.xlu0 %978, %v246_v36  }
  0x78   :  { %981 = vset.pattern.permute.xlu1 %v1076_v39  ;;  %980 = vset.pattern.permute.xlu0 %v1076_v39 }
  0x79   :  { %284 = vperm.xlu1 %981, %v246_v36   ;;  %280 = vperm.xlu0 %980, %v142_v35  }
  0x7d   :  { %982 = vset.pattern.permute.xlu1 %v1077_v47  ;;  %983 = vset.pattern.permute.xlu0 %v1077_v47 }
  0x7e   :  { %293 = vperm.xlu1 %982, %v142_v35   ;;  %297 = vperm.xlu0 %983, %v246_v36  }
  0x82   :  { %984 = vset.pattern.permute.xlu1 %v1079_v60  ;;  %985 = vset.pattern.permute.xlu0 %v1079_v60 }
  0x83   :  { %305 = vperm.xlu1 %984, %v142_v35  }
  0x87   :  { %309 = vperm.xlu1 %984, %v246_v36  }
  0xeb   :  { %v268_v1 = vpop.permute.xlu1 %267  ;;  %v255_v2 = vpop.permute.xlu0 %254 }
  0xef   :  { %v272_v5 = vpop.permute.xlu1 %271  ;;  %v260_v9 = vpop.permute.xlu0 %259 }
  0xf0   :  { %v274_v19 = vsel %vm265_vm1, %v268_v1, %v272_v5  ;;  %v262_v20 = vsel %vm251_vm2, %v255_v2, %v260_v9 }
  0xf1   :  { %v275_v24 = vmul.f32 %v274_v19, %v262_v20 }
  0xf4   :  { %v285_v13 = vpop.permute.xlu1 %284  ;;  %v281_v16 = vpop.permute.xlu0 %280 }
  0xf5   :  { %v287_v23 = vsel %vm278_vm3, %v281_v16, %v285_v13 }
  0xf6   :  { %v288_v27 = vmul.f32 %v287_v23, %v275_v24 }
  0xf9   :  { %v294_v18 = vpop.permute.xlu1 %293  ;;  %v298_v21 = vpop.permute.xlu0 %297 }
  0xfa   :  { %v300_v26 = vsel %vm291_vm4, %v294_v18, %v298_v21 }
  0xfb   :  { %v301_v28 = vmul.f32 %v300_v26, %v288_v27 }
  0xfe   :  { %v306_v25 = vpop.permute.xlu1 %305 }
 0x102   :  { %v310_v6 = vpop.permute.xlu1 %309 }
 0x103   :  { %v312_v29 = vsel %vm303_vm5, %v306_v25, %v310_v6 }
 0x104   :  { %v313_v30 = vmul.f32 %v312_v29, %v301_v28 }
 0x106   :  { %v320_v31 = vsel %vm318_vm6, %v313_v30, 0 }
 0x107   :  { %v391_v32 = vand.u32 4294901760, %v320_v31 }
 0x109   :  { %v392_v33 = vsub.f32 %v320_v31, %v391_v32  ;;  %910 = vmatmul.mubr.f32.vlgmr.msra.gmra.mxu1 %v391_v32 }
 0x10a   :  { %924 = vmatpush3.msra.mxu1 %v1124_v38  ;;  %931 = vmatprep.mubr.msk.f32.mxu1 %vm1080_vm0, %v1078_v52 }
 0x10b   :  { %925 = vmatprep.subr.mxu1 %v1078_v52  ;;  %v393_v34 = vand.u32 4294901760, %v392_v33 }
 0x10c   :  { %926 = vmatpush3.msra.mxu1 %v1129_v41 }
 0x10d   :  { %927 = vmatprep.subr.mxu1 %v1078_v52  ;;  %v394_v35 = vsub.f32 %v392_v33, %v393_v34 }
 0x10e   :  { %928 = vmatpush3.msra.mxu1 %v1135_v45 }
 0x10f   :  { %929 = vmatprep.subr.mxu1 %v1078_v52  ;;  %v395_v36 = vand.u32 4294901760, %v394_v35 }
 0x110   :  { %930 = vmatpush3.msra.mxu1 %v1144_v51 }
 0x111   :  { %932 = vmatmul.mubr.f32.vlgmr.msra.gmra.mxu1 %v393_v34  ;;  %945 = vmatprep.subr.mxu1 %v1078_v52 }
 0x112   :  { %899 = vmatmul.mubr.f32.vlgmr.msra.gmra.mxu0 %v395_v36  ;;  %946 = vmatpush3.msra.mxu1 %v1124_v38 }
 0x113   :  { %913 = vmatpush3.msra.mxu0 %v1127_v3  ;;  %947 = vmatprep.subr.mxu1 %v1078_v52 }
 0x114   :  { %914 = vmatprep.subr.mxu0 %v1078_v52  ;;  %948 = vmatpush3.msra.mxu1 %v1129_v41 }
 0x115   :  { %915 = vmatpush3.msra.mxu0 %v1133_v44  ;;  %949 = vmatprep.subr.mxu1 %v1078_v52 }
 0x116   :  { %916 = vmatprep.subr.mxu0 %v1078_v52  ;;  %950 = vmatpush3.msra.mxu1 %v1135_v45 }
 0x117   :  { %917 = vmatpush3.msra.mxu0 %v1142_v50  ;;  %951 = vmatprep.subr.mxu1 %v1078_v52 }
 0x118   :  { %918 = vmatprep.subr.mxu0 %v1078_v52  ;;  %920 = vmatprep.mubr.msk.f32.mxu0 %vm1080_vm0, %v1078_v52 }
 0x119   :  { %919 = vmatpush3.msra.mxu0 %v1152_v56  ;;  %952 = vmatpush3.msra.mxu1 %v1144_v51 }
 0x11a   :  { %953 = vmatprep.mubr.msk.f32.mxu1 %vm1080_vm0, %v1078_v52  ;;  %921 = vmatmul.mubr.f32.vlgmr.msra.gmra.mxu0 %v392_v33 }
 0x11b   :  { %934 = vmatprep.subr.mxu0 %v1078_v52  ;;  %954 = vmatmul.mubr.f32.vlgmr.msra.gmra.mxu1 %v391_v32 }
 0x11c   :  { %935 = vmatpush3.msra.mxu0 %v428_v43  ;;  %942 = vmatprep.mubr.msk.f32.mxu0 %vm1080_vm0, %v1078_v52 }
 0x11d   :  { %936 = vmatprep.subr.mxu0 %v1078_v52 }
 0x11e   :  { %937 = vmatpush3.msra.mxu0 %v435_v49 }
 0x11f   :  { %938 = vmatprep.subr.mxu0 %v1078_v52 }
 0x120   :  { %939 = vmatpush3.msra.mxu0 %v442_v55 }
 0x121   :  { %940 = vmatprep.subr.mxu0 %v1078_v52 }
 0x122   :  { %941 = vmatpush3.msra.mxu0 %v449_v59 }
 0x123   :  { %943 = vmatmul.mubr.f32.vlgmr.msra.gmra.mxu0 %v391_v32 }
 0x1c9   :  { %v488_v37 = vpop.f32.mrf.mxu1 }
 0x1cb   :  { %v911_v38 = vpop.f32.mrf.mxu1 }
 0x1d1   :  { %v645_v39 = vpop.f32.mrf.mxu1 }
 0x1d2   :  { %v397_v40 = vpop.f32.mrf.mxu0 }
 0x1d3   :  { %v933_v3 = vpop.f32.mrf.mxu1  ;;  %v489_v44 = vadd.f32 %v488_v37, %v397_v40 }
 0x1d4   :  { %v900_v41 = vpop.f32.mrf.mxu0 }
 0x1da   :  { %v568_v42 = vpop.f32.mrf.mxu0 }
 0x1db   :  { %v803_v43 = vpop.f32.mrf.mxu1  ;;  %v569_v47 = vadd.f32 %v568_v42, %v489_v44 }
 0x1dc   :  { %v922_v45 = vpop.f32.mrf.mxu0 }
 0x1dd   :  { %v955_v46 = vpop.f32.mrf.mxu1  ;;  %v646_v48 = vadd.f32 %v645_v39, %v569_v47 }
 0x1e3   :  { %v728_v49 = vpop.f32.mrf.mxu0 }
 0x1e4   :  { %v729_v50 = vadd.f32 %v728_v49, %v646_v48 }
 0x1e5   :  { %v944_v51 = vpop.f32.mrf.mxu0 }
 0x1e6   :  { %v804_v52 = vadd.f32 %v803_v43, %v729_v50 }
 0x1e8   :  { %v807_v53 = vmul.f32 %v804_v52, %v804_v52 }
 0x1ea   :  { %v816_v54 = vsel %vm815_vm7, %v807_v53, -inf  ;;  %v809_v55 = vsel %vm808_vm8, %v807_v53, -inf  ;;  %v823_v56 = vsel %vm822_vm9, %v807_v53, -inf  ;;  %v830_v57 = vsel %vm829_vm10, %v807_v53, -inf }
 0x1eb   :  { %817 = vmax.xlane.f32.xlu1 %v816_v54  ;;  %810 = vmax.xlane.f32.xlu0 %v809_v55 }
 0x1ef   :  { %824 = vmax.xlane.f32.xlu0 %v823_v56 }
 0x1f3   :  { %831 = vmax.xlane.f32.xlu0 %v830_v57 }
 0x274   :  { %v818_v58 = vpop.xlane.xlu1 %817  ;;  %v811_v59 = vpop.xlane.xlu0 %810 }
 0x275   :  { %990 = vrcp.f32 %v818_v58 }
 0x276   :  { %992 = vrcp.f32 %v811_v59 }
 0x278   :  { %v825_v60 = vpop.xlane.xlu0 %824 }
 0x279   :  { %994 = vrcp.f32 %v825_v60 }
 0x27c   :  { %v832_v61 = vpop.xlane.xlu0 %831 }
 0x27d   :  { %996 = vrcp.f32 %v832_v61 }
 0x282   :  { %v991_v62 = vpop.eup %990 }
 0x283   :  { %v993_v63 = vpop.eup %992  ;;  %v820_v0 = vmul.f32 %v991_v62, %v807_v53 }
 0x284   :  { %v813_v1 = vmul.f32 %v993_v63, %v807_v53 }
 0x286   :  { %v995_v2 = vpop.eup %994  ;;  %814 = vst.msk [vmem:[#allocation7] sm:$0x3] %vm808_vm8, %v813_v1 }
 0x287   :  { %821 = vst.msk [vmem:[#allocation7] sm:$0x3] %vm815_vm7, %v820_v0  ;;  %v827_v4 = vmul.f32 %v995_v2, %v807_v53 }
 0x289   :  { %828 = vst.msk [vmem:[#allocation7] sm:$0x3] %vm822_vm9, %v827_v4 }
 0x28a   :  { %v997_v5 = vpop.eup %996 }
 0x28b   :  { %v834_v7 = vmul.f32 %v997_v5, %v807_v53 }
 0x28d   :  { %835 = vst.msk [vmem:[#allocation7] sm:$0x3] %vm829_vm10, %v834_v7 }
 0x28e   :  { %1049 = shalt.err (!%p1046_p0)
}
 0x28f   :  { %845 = dma.vmem_to_hbm [thread:$0]  %s843_s1, 32, %s1233_s2, [#allocation4]  }
 0x290   :  { %1062 = dma.done.wait [#allocation4], 32  }
 0x291   :  { %1063 = vsyncadd [#allocation4], 4294967264 }
 0x292   :  { %849 = vsyncpa [#allocation3], 1 }
 0x293   :  { %850 = vsyncpa [#allocation6], 1 }
 0x294   :  { %851 = vsyncpa [#allocation4], 1 }

</bundles_post_ra>
